<compile_context>
chip_gen: v7x
topology: tpu7x:2x2x1
jax: 0.10.0
libtpu: 0.0.40
codegen_flags: <defaults>
</compile_context>

<pallas_src>
import jax
import jax.numpy as jnp
from jax.experimental import pallas as pl
from jax.experimental.pallas import tpu as pltpu

C_IN = 10       # fixed by the module: nn.Conv2d(10, 1, kernel_size=1)
N_CONVS = 1024  # module allocates 1024 pointwise convs; forward uses the first T


def _round_up(x, m):
    return ((x + m - 1) // m) * m


def _choose_tiling(B, T, S_pad, x_bytes):
    """Generation-aware block sizes.  Returns (b_blk, t_blk, s_blk, vmem_limit)."""
    # Sublane tile for the x dtype: second-to-last block dim must be a
    # multiple of this whenever it is not the full array dim.
    sub = 8 * max(1, 4 // x_bytes)           # f32: 8, bf16: 16, int8/fp8: 32

    # Physical VMEM -> budget / compiler limit / per-step DMA-size floor.
    try:
        vmem_cap = pltpu.get_tpu_info().vmem_capacity_bytes
    except Exception:
        vmem_cap = 64 << 20                   # conservative fallback (v7x-like)
    if vmem_cap >= (100 << 20):               # v5e / v6e: 128 MiB physical
        budget, vmem_limit = 56 << 20, 96 << 20
        slab_floor = 1 << 20                  # ~1 MiB x slab amortizes 0.35 us/step
    else:                                     # v7x: 64 MiB physical (32 MiB scoped)
        budget, vmem_limit = 24 << 20, 32 << 20
        slab_floor = 2 << 20                  # HBM ~4x faster -> need bigger slabs

    # VMEM bytes per (batch, timestep) unit of block as a function of s_blk:
    # double-buffered x slab + double-buffered out slab + f32 acc temporaries.
    def bytes_per_bt(s):
        return s * (2 * C_IN * x_bytes + 2 * x_bytes + 2 * 4)

    # Only shrink the lane dim if even the minimum-legal t block cannot fit.
    s_blk = S_pad
    t_min = T if T <= sub else sub
    while s_blk > 128 and t_min * bytes_per_bt(s_blk) > budget:
        s_blk = max(128, ((s_blk // 2) // 128) * 128)

    max_bt = max(1, budget // bytes_per_bt(s_blk))

    # Timestep block: full-dim if small (always legal), else a multiple of the
    # sublane tile, as large as the VMEM budget allows.
    if T <= sub:
        t_blk = T
    else:
        t_blk = min(T, max_bt)
        t_blk = max(sub, (t_blk // sub) * sub)

    # Batch block: grow until each step moves at least `slab_floor` bytes of x
    # (important when H*W is small), without blowing the VMEM budget.
    b_blk = 1
    while (b_blk < B
           and 2 * b_blk * t_blk <= max_bt
           and b_blk * C_IN * t_blk * s_blk * x_bytes < slab_floor):
        b_blk *= 2
    b_blk = min(b_blk, B)

    # Keep at least 2 grid steps so both v7x TensorCores get work.
    def n_steps(bb, tb):
        return pl.cdiv(B, bb) * pl.cdiv(T, tb) * pl.cdiv(S_pad, s_blk)

    while n_steps(b_blk, t_blk) < 2 and (b_blk > 1 or t_blk > sub):
        if b_blk > 1:
            b_blk //= 2
        else:
            t_blk = max(sub, ((t_blk // 2) // sub) * sub)

    return b_blk, t_blk, s_blk, vmem_limit


def conv_over_time(x, weights, biases):
    """x: [B, C_IN, T, H, W] (PyTorch layout).
    weights: [N_CONVS, 1, C_IN, 1, 1]  (one Conv2d(10,1,1) weight per timestep)
    biases:  [N_CONVS]
    returns: [B, 1, T, H, W]  (== torch.cat of the per-timestep conv outputs)."""
    B, C, T, H, W = x.shape
    assert C == C_IN, f"expected {C_IN} input channels, got {C}"
    assert T <= N_CONVS, f"one conv per spatial map: T={T} exceeds {N_CONVS}"

    S = H * W
    x_bytes = jnp.dtype(x.dtype).itemsize

    # Lane density: pad S to a multiple of 128 only when needed so output
    # stores are full (unmasked) vst's.  Free reshape otherwise.
    S_pad = _round_up(S, 128)
    xk = x.reshape(B, C, T, S)
    if S_pad != S:
        xk = jnp.pad(xk, ((0, 0), (0, 0), (0, 0), (0, S_pad - S)))

    b_blk, t_blk, s_blk, vmem_limit = _choose_tiling(B, T, S_pad, x_bytes)
    nb, nt, ns = pl.cdiv(B, b_blk), pl.cdiv(T, t_blk), pl.cdiv(S_pad, s_blk)

    # Tiny per-timestep parameter tables, zero-padded to the T block grid so
    # the per-step BlockSpecs never index past the end.
    T_pad = nt * t_blk
    wk = weights[:T].reshape(T, C).astype(jnp.float32)      # [T, C]
    bk = biases[:T].reshape(T, 1).astype(jnp.float32)       # [T, 1]
    if T_pad != T:
        wk = jnp.pad(wk, ((0, T_pad - T), (0, 0)))
        bk = jnp.pad(bk, ((0, T_pad - T), (0, 0)))

    def kernel(x_ref, w_ref, b_ref, o_ref):
        # x_ref: VMEM (b_blk, C, t_blk, s_blk)   one (batch, timestep, lane) slab
        # w_ref: VMEM (t_blk, C)                 per-step weight rows (tiny DMA)
        # b_ref: VMEM (t_blk, 1)                 per-step bias rows
        # o_ref: VMEM (b_blk, t_blk, s_blk)      lane-dense output slab
        w = w_ref[...]                           # [t_blk, C] f32
        bias = b_ref[...]                        # [t_blk, 1] f32
        # Unrolled channel reduce on the VPU; native-dtype x loads, f32
        # accumulation via promotion against the f32 weight columns.
        acc = w[:, 0:1] * x_ref[:, 0, :, :] + bias
        for c in range(1, C_IN):
            acc = acc + w[:, c:c + 1] * x_ref[:, c, :, :]
        o_ref[...] = acc.astype(o_ref.dtype)

    out = pl.pallas_call(
        kernel,
        out_shape=jax.ShapeDtypeStruct((B, T, S_pad), x.dtype),
        grid=(nb, nt, ns),
        in_specs=[
            pl.BlockSpec((b_blk, C, t_blk, s_blk), lambda b, t, s: (b, 0, t, s)),
            pl.BlockSpec((t_blk, C), lambda b, t, s: (t, 0)),
            pl.BlockSpec((t_blk, 1), lambda b, t, s: (t, 0)),
        ],
        out_specs=pl.BlockSpec((b_blk, t_blk, s_blk), lambda b, t, s: (b, t, s)),
        compiler_params=pltpu.CompilerParams(
            dimension_semantics=("parallel", "parallel", "parallel"),
            vmem_limit_bytes=vmem_limit),
    )(xk, wk, bk)

    # Back to the PyTorch output layout [B, 1, T, H, W]; crop only if padded.
    if S_pad != S:
        out = out[:, :, :S]
    return out.reshape(B, T, H, W)[:, None]


if __name__ == "__main__":
    key = jax.random.PRNGKey(0)
    kx, kw, kb = jax.random.split(key, 3)

    B, T, H, W = 2, 8, 16, 16
    x = jax.random.normal(kx, (B, C_IN, T, H, W), dtype=jnp.float32)

    # Deterministic synthetic parameters for the 1024 pointwise convs.
    weights = 0.1 * jax.random.normal(kw, (N_CONVS, 1, C_IN, 1, 1), jnp.float32)
    biases = 0.1 * jax.random.normal(kb, (N_CONVS,), jnp.float32)

    out = jax.block_until_ready(conv_over_time(x, weights, biases))

    # Pure-JAX reference of the PyTorch forward.
    w_t = weights[:T, 0, :, 0, 0]                                    # [T, C]
    ref = jnp.einsum("bcthw,tc->bthw", x, w_t) + biases[:T][None, :, None, None]
    ref = ref[:, None]                                               # [B, 1, T, H, W]

    assert out.shape == (B, 1, T, H, W), out.shape
    assert jnp.allclose(out, ref, atol=1e-5, rtol=1e-5)
    print("KERNEL_OK")
</pallas_src>

<mosaic_0001>
module attributes {stable_mosaic.version = 11 : i64} {
  func.func @kernel(%arg0: i32, %arg1: i32, %arg2: i32, %arg3: memref<1x10x8x256xf32, #tpu.memory_space<vmem>>, %arg4: memref<8x10xf32, #tpu.memory_space<vmem>>, %arg5: memref<8x1xf32, #tpu.memory_space<vmem>>, %arg6: memref<1x8x256xf32, #tpu.memory_space<vmem>>) attributes {dimension_semantics = [#tpu.dimension_semantics<parallel>, #tpu.dimension_semantics<parallel>, #tpu.dimension_semantics<parallel>], iteration_bounds = array<i64: 2, 1, 1>, scalar_prefetch = 0 : i64, scratch_operands = 0 : i64, tpu.core_type = #tpu.core_type<tc>, window_params = [{transform_indices = @transform_0, window_bounds = array<i64: 1, 10, 8, 256>}, {transform_indices = @transform_1, window_bounds = array<i64: 8, 10>}, {transform_indices = @transform_2, window_bounds = array<i64: 8, 1>}, {transform_indices = @transform_3, window_bounds = array<i64: 1, 8, 256>}]} {
    %c0 = arith.constant 0 : index
    %c0_0 = arith.constant 0 : index
    %0 = vector.load %arg4[%c0, %c0_0] : memref<8x10xf32, #tpu.memory_space<vmem>>, vector<8x10xf32>
    %c0_1 = arith.constant 0 : index
    %c0_2 = arith.constant 0 : index
    %1 = vector.load %arg5[%c0_1, %c0_2] : memref<8x1xf32, #tpu.memory_space<vmem>>, vector<8x1xf32>
    %2 = vector.extract_strided_slice %0 {offsets = [0, 0], sizes = [8, 1], strides = [1, 1]} : vector<8x10xf32> to vector<8x1xf32>
    %c0_3 = arith.constant 0 : index
    %c0_4 = arith.constant 0 : index
    %c0_5 = arith.constant 0 : index
    %c0_6 = arith.constant 0 : index
    %3 = vector.load %arg3[%c0_3, %c0_4, %c0_5, %c0_6] : memref<1x10x8x256xf32, #tpu.memory_space<vmem>>, vector<1x1x8x256xf32>
    %4 = vector.shape_cast %3 : vector<1x1x8x256xf32> to vector<1x8x256xf32>
    %5 = vector.shape_cast %2 : vector<8x1xf32> to vector<1x8x1xf32>
    %6 = vector.broadcast %5 : vector<1x8x1xf32> to vector<1x8x256xf32>
    %7 = arith.mulf %6, %4 : vector<1x8x256xf32>
    %8 = vector.shape_cast %1 : vector<8x1xf32> to vector<1x8x1xf32>
    %9 = vector.broadcast %8 : vector<1x8x1xf32> to vector<1x8x256xf32>
    %10 = arith.addf %7, %9 : vector<1x8x256xf32>
    %11 = vector.extract_strided_slice %0 {offsets = [0, 1], sizes = [8, 1], strides = [1, 1]} : vector<8x10xf32> to vector<8x1xf32>
    %c0_7 = arith.constant 0 : index
    %c1 = arith.constant 1 : index
    %c0_8 = arith.constant 0 : index
    %c0_9 = arith.constant 0 : index
    %12 = vector.load %arg3[%c0_7, %c1, %c0_8, %c0_9] : memref<1x10x8x256xf32, #tpu.memory_space<vmem>>, vector<1x1x8x256xf32>
    %13 = vector.shape_cast %12 : vector<1x1x8x256xf32> to vector<1x8x256xf32>
    %14 = vector.shape_cast %11 : vector<8x1xf32> to vector<1x8x1xf32>
    %15 = vector.broadcast %14 : vector<1x8x1xf32> to vector<1x8x256xf32>
    %16 = arith.mulf %15, %13 : vector<1x8x256xf32>
    %17 = arith.addf %10, %16 : vector<1x8x256xf32>
    %18 = vector.extract_strided_slice %0 {offsets = [0, 2], sizes = [8, 1], strides = [1, 1]} : vector<8x10xf32> to vector<8x1xf32>
    %c0_10 = arith.constant 0 : index
    %c2 = arith.constant 2 : index
    %c0_11 = arith.constant 0 : index
    %c0_12 = arith.constant 0 : index
    %19 = vector.load %arg3[%c0_10, %c2, %c0_11, %c0_12] : memref<1x10x8x256xf32, #tpu.memory_space<vmem>>, vector<1x1x8x256xf32>
    %20 = vector.shape_cast %19 : vector<1x1x8x256xf32> to vector<1x8x256xf32>
    %21 = vector.shape_cast %18 : vector<8x1xf32> to vector<1x8x1xf32>
    %22 = vector.broadcast %21 : vector<1x8x1xf32> to vector<1x8x256xf32>
    %23 = arith.mulf %22, %20 : vector<1x8x256xf32>
    %24 = arith.addf %17, %23 : vector<1x8x256xf32>
    %25 = vector.extract_strided_slice %0 {offsets = [0, 3], sizes = [8, 1], strides = [1, 1]} : vector<8x10xf32> to vector<8x1xf32>
    %c0_13 = arith.constant 0 : index
    %c3 = arith.constant 3 : index
    %c0_14 = arith.constant 0 : index
    %c0_15 = arith.constant 0 : index
    %26 = vector.load %arg3[%c0_13, %c3, %c0_14, %c0_15] : memref<1x10x8x256xf32, #tpu.memory_space<vmem>>, vector<1x1x8x256xf32>
    %27 = vector.shape_cast %26 : vector<1x1x8x256xf32> to vector<1x8x256xf32>
    %28 = vector.shape_cast %25 : vector<8x1xf32> to vector<1x8x1xf32>
    %29 = vector.broadcast %28 : vector<1x8x1xf32> to vector<1x8x256xf32>
    %30 = arith.mulf %29, %27 : vector<1x8x256xf32>
    %31 = arith.addf %24, %30 : vector<1x8x256xf32>
    %32 = vector.extract_strided_slice %0 {offsets = [0, 4], sizes = [8, 1], strides = [1, 1]} : vector<8x10xf32> to vector<8x1xf32>
    %c0_16 = arith.constant 0 : index
    %c4 = arith.constant 4 : index
    %c0_17 = arith.constant 0 : index
    %c0_18 = arith.constant 0 : index
    %33 = vector.load %arg3[%c0_16, %c4, %c0_17, %c0_18] : memref<1x10x8x256xf32, #tpu.memory_space<vmem>>, vector<1x1x8x256xf32>
    %34 = vector.shape_cast %33 : vector<1x1x8x256xf32> to vector<1x8x256xf32>
    %35 = vector.shape_cast %32 : vector<8x1xf32> to vector<1x8x1xf32>
    %36 = vector.broadcast %35 : vector<1x8x1xf32> to vector<1x8x256xf32>
    %37 = arith.mulf %36, %34 : vector<1x8x256xf32>
    %38 = arith.addf %31, %37 : vector<1x8x256xf32>
    %39 = vector.extract_strided_slice %0 {offsets = [0, 5], sizes = [8, 1], strides = [1, 1]} : vector<8x10xf32> to vector<8x1xf32>
    %c0_19 = arith.constant 0 : index
    %c5 = arith.constant 5 : index
    %c0_20 = arith.constant 0 : index
    %c0_21 = arith.constant 0 : index
    %40 = vector.load %arg3[%c0_19, %c5, %c0_20, %c0_21] : memref<1x10x8x256xf32, #tpu.memory_space<vmem>>, vector<1x1x8x256xf32>
    %41 = vector.shape_cast %40 : vector<1x1x8x256xf32> to vector<1x8x256xf32>
    %42 = vector.shape_cast %39 : vector<8x1xf32> to vector<1x8x1xf32>
    %43 = vector.broadcast %42 : vector<1x8x1xf32> to vector<1x8x256xf32>
    %44 = arith.mulf %43, %41 : vector<1x8x256xf32>
    %45 = arith.addf %38, %44 : vector<1x8x256xf32>
    %46 = vector.extract_strided_slice %0 {offsets = [0, 6], sizes = [8, 1], strides = [1, 1]} : vector<8x10xf32> to vector<8x1xf32>
    %c0_22 = arith.constant 0 : index
    %c6 = arith.constant 6 : index
    %c0_23 = arith.constant 0 : index
    %c0_24 = arith.constant 0 : index
    %47 = vector.load %arg3[%c0_22, %c6, %c0_23, %c0_24] : memref<1x10x8x256xf32, #tpu.memory_space<vmem>>, vector<1x1x8x256xf32>
    %48 = vector.shape_cast %47 : vector<1x1x8x256xf32> to vector<1x8x256xf32>
    %49 = vector.shape_cast %46 : vector<8x1xf32> to vector<1x8x1xf32>
    %50 = vector.broadcast %49 : vector<1x8x1xf32> to vector<1x8x256xf32>
    %51 = arith.mulf %50, %48 : vector<1x8x256xf32>
    %52 = arith.addf %45, %51 : vector<1x8x256xf32>
    %53 = vector.extract_strided_slice %0 {offsets = [0, 7], sizes = [8, 1], strides = [1, 1]} : vector<8x10xf32> to vector<8x1xf32>
    %c0_25 = arith.constant 0 : index
    %c7 = arith.constant 7 : index
    %c0_26 = arith.constant 0 : index
    %c0_27 = arith.constant 0 : index
    %54 = vector.load %arg3[%c0_25, %c7, %c0_26, %c0_27] : memref<1x10x8x256xf32, #tpu.memory_space<vmem>>, vector<1x1x8x256xf32>
    %55 = vector.shape_cast %54 : vector<1x1x8x256xf32> to vector<1x8x256xf32>
    %56 = vector.shape_cast %53 : vector<8x1xf32> to vector<1x8x1xf32>
    %57 = vector.broadcast %56 : vector<1x8x1xf32> to vector<1x8x256xf32>
    %58 = arith.mulf %57, %55 : vector<1x8x256xf32>
    %59 = arith.addf %52, %58 : vector<1x8x256xf32>
    %60 = vector.extract_strided_slice %0 {offsets = [0, 8], sizes = [8, 1], strides = [1, 1]} : vector<8x10xf32> to vector<8x1xf32>
    %c0_28 = arith.constant 0 : index
    %c8 = arith.constant 8 : index
    %c0_29 = arith.constant 0 : index
    %c0_30 = arith.constant 0 : index
    %61 = vector.load %arg3[%c0_28, %c8, %c0_29, %c0_30] : memref<1x10x8x256xf32, #tpu.memory_space<vmem>>, vector<1x1x8x256xf32>
    %62 = vector.shape_cast %61 : vector<1x1x8x256xf32> to vector<1x8x256xf32>
    %63 = vector.shape_cast %60 : vector<8x1xf32> to vector<1x8x1xf32>
    %64 = vector.broadcast %63 : vector<1x8x1xf32> to vector<1x8x256xf32>
    %65 = arith.mulf %64, %62 : vector<1x8x256xf32>
    %66 = arith.addf %59, %65 : vector<1x8x256xf32>
    %67 = vector.extract_strided_slice %0 {offsets = [0, 9], sizes = [8, 1], strides = [1, 1]} : vector<8x10xf32> to vector<8x1xf32>
    %c0_31 = arith.constant 0 : index
    %c9 = arith.constant 9 : index
    %c0_32 = arith.constant 0 : index
    %c0_33 = arith.constant 0 : index
    %68 = vector.load %arg3[%c0_31, %c9, %c0_32, %c0_33] : memref<1x10x8x256xf32, #tpu.memory_space<vmem>>, vector<1x1x8x256xf32>
    %69 = vector.shape_cast %68 : vector<1x1x8x256xf32> to vector<1x8x256xf32>
    %70 = vector.shape_cast %67 : vector<8x1xf32> to vector<1x8x1xf32>
    %71 = vector.broadcast %70 : vector<1x8x1xf32> to vector<1x8x256xf32>
    %72 = arith.mulf %71, %69 : vector<1x8x256xf32>
    %73 = arith.addf %66, %72 : vector<1x8x256xf32>
    %c0_34 = arith.constant 0 : index
    %c0_35 = arith.constant 0 : index
    %c0_36 = arith.constant 0 : index
    %74 = vector.load %arg6[%c0_34, %c0_35, %c0_36] : memref<1x8x256xf32, #tpu.memory_space<vmem>>, vector<1x8x256xf32>
    tpu.vector_store %arg6[%c0_34, %c0_35, %c0_36], %73 {strides = array<i32>} : memref<1x8x256xf32, #tpu.memory_space<vmem>>, vector<1x8x256xf32>,
    return
  }
  func.func @transform_0(%arg0: i32, %arg1: i32, %arg2: i32) -> (i32, i32, i32, i32) {
    %c0_i32 = arith.constant 0 : i32
    %c0_i32_0 = arith.constant 0 : i32
    return %arg0, %c0_i32, %arg1, %arg2 : i32, i32, i32, i32
  }
  func.func @transform_1(%arg0: i32, %arg1: i32, %arg2: i32) -> (i32, i32) {
    %c0_i32 = arith.constant 0 : i32
    %c0_i32_0 = arith.constant 0 : i32
    return %arg1, %c0_i32 : i32, i32
  }
  func.func @transform_2(%arg0: i32, %arg1: i32, %arg2: i32) -> (i32, i32) {
    %c0_i32 = arith.constant 0 : i32
    %c0_i32_0 = arith.constant 0 : i32
    return %arg1, %c0_i32 : i32, i32
  }
  func.func @transform_3(%arg0: i32, %arg1: i32, %arg2: i32) -> (i32, i32, i32) {
    %c0_i32 = arith.constant 0 : i32
    return %arg0, %arg1, %arg2 : i32, i32, i32
  }
}

</mosaic_0001>

<bundles_post_ra>
// kernel: tpu_custom_call.1
= control target key start
LH: loop header
LB: loop body
LE: loop exit
PB: predicated region body
PF: predicated region fallthrough
CT: control target
= control target key end

     0   :  { %8 = vsyncpa [#allocation3], 0  ;;  %s985_s0 = inlined_call_operand.hbm [shape: f32[2,10,8,256], index: 0, kind: input, shape index: {}]   ;;  %s986_s1 = inlined_call_operand.vmem [shape: f32[8,10], index: 1, kind: input, shape index: {}]   ;;  %s987_s2 = inlined_call_operand.vmem [shape: f32[8,1], index: 2, kind: input, shape index: {}]   ;;  %s988_s3 = inlined_call_operand.hbm [shape: f32[2,8,256], index: 3, kind: output, shape index: {}]  }
   0x1   :  { %10 = vsyncpa [#allocation3 + $0x1], 0 }
   0x2   :  { %11 = vsyncpa [#allocation4], 0 }
   0x3   :  { %13 = vsyncpa [#allocation4 + $0x1], 0  ;;  %s783_s12 = smov 0   ;;  %s785_s13 = smov 0  }
   0x4   :  { %s787_s14 = smov 0   ;;  %s789_s15 = smov 0  }
   0x5   :  { %s791_s16 = smov 0   ;;  %s793_s17 = smov 0  }
   0x6 LB: > { %s515_s18 = sadd.s32 4294967295, %s747_s17   ;;  %s516_s19 = sadd.s32 4294967294, %s747_s17   ;;  %s747_s17 = sphi %s793_s17, %s19_s17   ;;  %s743_s16 = sphi %s791_s16, %s1003_s16   ;;  %s739_s15 = sphi %s789_s15, %s1002_s15   ;;  %s735_s14 = sphi %s787_s14, %s1001_s14   ;;  %s731_s13 = sphi %s785_s13, %s1000_s13   ;;  %s727_s12 = sphi %s783_s12, %s999_s12  }
   0x7   : > { %s38_s20 = sadd.s32 1, %s743_s16  ;;  %s49_s21 = sadd.s32 1, %s735_s14 }
   0x8   : > { %p40_p0 = scmp.ge.s32.totalorder %s38_s20, 2  ;;  %p56_p1 = scmp.ne.s32.totalorder %s735_s14, %s731_s13 }
   0x9   : > { %p57_p2 = scmp.eq.s32.totalorder %s747_s17, 0  ;;  %p62_p3 = scmp.ne.s32.totalorder %s731_s13, %s727_s12 }
   0xa   : > { %s1005_s20 = smov (%p40_p0, %s38_s20), 0  ;;  %p63_p5 = scmp.eq.s32.totalorder %s515_s18, 0 }
   0xb   : > { %p824_p4 = por %p57_p2, %p56_p1  ;;  %s42_s23 = ssub.s32 %s743_s16, %s1005_s20 }
   0xc   : > { %p142_p6 = scmp.eq.s32.totalorder %s515_s18, 1  ;;  %p47_p7 = scmp.eq.s32.totalorder %s42_s23, 0 }
   0xd   : > { %p830_p8 = por %p63_p5, %p62_p3  ;;  %p148_p10 = scmp.eq.s32.totalorder %s516_s19, 1 }
   0xe   : > { %p834_p9 = por %p142_p6, %p56_p1  ;;  %p563_p13 = scmp.lt.s32.totalorder %s747_s17, 2 }
   0xf   : > { %s839_s26 = scalar_select %p47_p7, %s735_s14, %s49_s21  }
  0x10   : > { %s992_s25 = scalar_select %p834_p9, 1, 0 }
  0x11   : > { %p841_p11 = por %p148_p10, %p62_p3  ;;  %s182_s28 = sand.u32 1, %s735_s14  }
  0x12   : > { %s548_s29 = smul.u32 160, %s182_s28  ;;  %p851_p0 = pnand %p563_p13, %p824_p4 }
  0x13   : > { %s993_s27 = scalar_select %p841_p11, 1, 0 }
  0x14   : > { %s549_s30 = smul.u32 2560, %s743_s16  ;;  %s186_s8 = scalar_lea.vmem [#allocation2], %s548_s29 }
  0x15   : > { %s197_s9 = sshll.u32 %s186_s8, 4  ;;  %s863_s10 = scalar_lea.sflag [#allocation3], %s182_s28  ;;  %s860_s9 = int_to_ptr.vmem [resolvable:$true] %s197_s9 }
  0x16   : > { %s858_s7 = scalar_lea.hbm %s985_s0, %s549_s30  ;;  %p637_p3 = pneg %p851_p0 }
  0x17   : > { %s635_s11 = scalar_lea.hbm %s858_s7, 2560  ;;  %s640_s21 = scalar_lea.hbm %s985_s0, 5120 }
  0x18   : > { %p636_p2 = scmp.ne.s32.totalorder %s858_s7, %s635_s11  ;;  %p641_p6 = scmp.lt.u32.totalorder %s858_s7, %s985_s0 }
  0x19   : > { %p642_p7 = scmp.lt.u32.totalorder %s640_s21, %s635_s11  ;;  %p644_p13 = scmp.lt.u32.totalorder %s635_s11, %s858_s7 }
  0x1a   : > { %p638_p4 = pnand %p637_p3, %p636_p2 }
  0x1b   : > { %p643_p10 = por %p642_p7, %p641_p6 }
  0x1c   : > { %p639_p5 = pneg %p638_p4 }
  0x1d   : > { %p645_p12 = por %p644_p13, %p643_p10 }
  0x1f   : > { %p646_p1 = pnand %p645_p12, %p639_p5 }
  0x21   : > { %649 = shalt.err (!%p646_p1)
}
  0x22   : > { %s650_s28 = scalar_lea.vmem %s860_s9, 2560  ;;  %s749_s29 = smov [#allocation2]  }
  0x23   : > { %p651_p2 = scmp.ne.s32.totalorder %s860_s9, %s650_s28  ;;  %s655_s30 = sshll.u32 %s749_s29, 4  ;;  %s656_s30 = int_to_ptr.vmem [resolvable:$false] %s655_s30 }
  0x24   : > { %s657_s5 = scalar_lea.vmem %s656_s30, 5120  ;;  %p658_p9 = scmp.lt.s32.totalorder %s860_s9, %s656_s30 }
  0x25   : > { %p653_p4 = pnand %p651_p2, %p637_p3  ;;  %p659_p6 = scmp.lt.s32.totalorder %s657_s5, %s650_s28 }
  0x27   : > { %p654_p11 = pneg %p653_p4  ;;  %p660_p7 = por %p659_p6, %p658_p9 }
  0x29   : > { %p661_p10 = pnand %p660_p7, %p654_p11 }
  0x2b   : > { %664 = shalt.err (!%p661_p10)
}
  0x2c   : > { %s750_s6 = smov 256   ;;  %s751_s8 = smov 16  }
  0x2d   : > { %558 = dma.hbm_to_vmem [thread:$0]  (!%p851_p0), %s858_s7, 2560, %s860_s9, %s863_s10, %s750_s6, %s750_s6, %s751_s8  }
  0x2e   : > { %p205_p12 = scmp.lt.s32.totalorder %s747_s17, 3  ;;  %p995_p1 = scmp.ge.s32.totalorder %s747_s17, 1 }
  0x30   : > { %p206_p3 = pnand %p995_p1, %p205_p12 }
  0x31   : > { %s895_s11 = sand.u32 (!%p206_p3), 1, %s731_s13  }
  0x32   : > { %209 = sbr.rel (%p206_p3) target bundleno = 233 (0xe9), region = 32  ;;  %s212_s19 = scalar_lea.sflag (!%p206_p3), [#allocation3], %s895_s11 }
  0x33   : > { %s550_s18 = smul.u32 (!%p206_p3), 160, %s895_s11 }
  0x35   : > { %s899_s21 = scalar_lea.vmem (!%p206_p3), [#allocation2], %s550_s18 }
  0x39   : > { %718 = dma.done.wait (%p830_p8), %s212_s19, 2560  }
  0x3a   : > { %720 = vsyncadd (%p830_p8), %s212_s19, 4294964736  ;;  %v752_v0 = vmov 1   ;;  %v753_v1 = vmov 0   ;;  %v256_v2 = vld [vmem:[%s986_s1] sm:$0xff]  ;;  %v754_v4 = vmov 2   ;;  %v755_v5 = vmov 3  }
  0x3b   : > { %626 = vset.pattern.permute.xlu1 %v752_v0  ;;  %625 = vset.pattern.permute.xlu0 %v753_v1  ;;  %v257_v3 = vld [vmem:[%s987_s2] sm:$0xff]  ;;  %v756_v6 = vmov 4   ;;  %v757_v7 = vmov 6   ;;  %v758_v8 = vmov 5   ;;  %v759_v9 = vmov 9   ;;  %v259_v13 = vld [vmem:[%s899_s21 + $0x8] sm:$0xff] }
  0x3c   : > { %278 = vperm.xlu1 %626, %v256_v2   ;;  %262 = vperm.xlu0 %625, %v256_v2   ;;  %v760_v10 = vmov 7   ;;  %v761_v11 = vmov 8   ;;  %v258_v12 = vld [vmem:[%s899_s21] sm:$0xff]  ;;  %v524_v18 = vld [vmem:[%s899_s21 + $0x10] sm:$0xff]  ;;  %v525_v19 = vld [vmem:[%s899_s21 + $0x18] sm:$0xff]  ;;  %s523_s24 = sshll.u32 %s895_s11, 4 }
  0x3d   : > { %v526_v20 = vld [vmem:[%s899_s21 + $0x20] sm:$0xff]  ;;  %v527_v21 = vld [vmem:[%s899_s21 + $0x28] sm:$0xff]  ;;  %v528_v32 = vld [vmem:[%s899_s21 + $0x30] sm:$0xff]  ;;  %s547_s22 = sshll.u32 %s739_s15, 8  ;;  %s245_s23 = scalar_lea.vmem [#allocation5], %s523_s24 }
  0x3e   : > { %v529_v33 = vld [vmem:[%s899_s21 + $0x38] sm:$0xff]  ;;  %v530_v37 = vld [vmem:[%s899_s21 + $0x40] sm:$0xff]  ;;  %v531_v38 = vld [vmem:[%s899_s21 + $0x48] sm:$0xff]  ;;  %s394_s28 = sshll.u32 %s245_s23, 4  ;;  %s936_s5 = scalar_lea.hbm %s988_s3, %s547_s22  ;;  %s938_s28 = int_to_ptr.vmem [resolvable:$true] %s394_s28 }
  0x3f   : > { %v532_v46 = vld [vmem:[%s899_s21 + $0x50] sm:$0xff]  ;;  %v533_v47 = vld [vmem:[%s899_s21 + $0x58] sm:$0xff]  ;;  %v534_v49 = vld [vmem:[%s899_s21 + $0x60] sm:$0xff]  ;;  %s376_s6 = scalar_lea.sflag [#allocation4], %s895_s11  ;;  %s665_s15 = scalar_lea.vmem %s938_s28, 256 }
  0x40   : > { %627 = vset.pattern.permute.xlu1 %v754_v4  ;;  %269 = vperm.xlu0 %625, %v257_v3   ;;  %v535_v50 = vld [vmem:[%s899_s21 + $0x68] sm:$0xff]  ;;  %v536_v60 = vld [vmem:[%s899_s21 + $0x70] sm:$0xff]  ;;  %v537_v61 = vld [vmem:[%s899_s21 + $0x78] sm:$0xff]  ;;  %p666_p8 = scmp.ne.s32.totalorder %s938_s28, %s665_s15  ;;  %p996_p9 = scmp.ne.s32.totalorder %s992_s25, 0 }
  0x41   : > { %289 = vperm.xlu1 %627, %v256_v2   ;;  %v540_v3 = vld [vmem:[%s899_s21 + $0x90] sm:$0xff]  ;;  %v541_v4 = vld [vmem:[%s899_s21 + $0x98] sm:$0xff]  ;;  %s762_s8 = smov [#allocation5]  }
  0x42   : > { %p667_p11 = pnand %p666_p8, %p996_p9  ;;  %s669_s18 = sshll.u32 %s762_s8, 4  ;;  %s670_s18 = int_to_ptr.vmem [resolvable:$false] %s669_s18 }
  0x43   : > { %s671_s19 = scalar_lea.vmem %s670_s18, 512  ;;  %p672_p5 = scmp.lt.s32.totalorder %s938_s28, %s670_s18 }
  0x44   : > { %628 = vset.pattern.permute.xlu0 %v755_v5  ;;  %p668_p0 = pneg %p667_p11  ;;  %p673_p13 = scmp.lt.s32.totalorder %s671_s19, %s665_s15 }
  0x45   : > { %629 = vset.pattern.permute.xlu1 %v756_v6  ;;  %300 = vperm.xlu0 %628, %v256_v2   ;;  %v538_v6 = vld [vmem:[%s899_s21 + $0x80] sm:$0xff] }
  0x46   : > { %311 = vperm.xlu1 %629, %v256_v2   ;;  %p674_p2 = por %p673_p13, %p672_p5 }
  0x48   : > { %p675_p4 = pnand %p674_p2, %p668_p0 }
  0x49   : > { %631 = vset.pattern.permute.xlu0 %v757_v7  ;;  %v539_v7 = vld [vmem:[%s899_s21 + $0x88] sm:$0xff] }
  0x4a   : > { %630 = vset.pattern.permute.xlu1 %v758_v8  ;;  %333 = vperm.xlu0 %631, %v256_v2  }
  0x4b   : > { %322 = vperm.xlu1 %630, %v256_v2  }
  0x4e   : > { %634 = vset.pattern.permute.xlu0 %v759_v9 }
  0x4f   : > { %632 = vset.pattern.permute.xlu1 %v760_v10  ;;  %366 = vperm.xlu0 %634, %v256_v2  }
  0x50   : > { %344 = vperm.xlu1 %632, %v256_v2  }
  0x54   : > { %633 = vset.pattern.permute.xlu1 %v761_v11 }
  0x55   : > { %355 = vperm.xlu1 %633, %v256_v2  }
  0xbb   : > { %v279_v14 = vpop.permute.xlu1 %278  ;;  %v263_v15 = vpop.permute.xlu0 %262 }
  0xbc   : > { %v265_v16 = vmul.f32 %v263_v15, %v258_v12  ;;  %v266_v17 = vmul.f32 %v263_v15, %v259_v13  ;;  %v281_v23 = vmul.f32 %v524_v18, %v279_v14  ;;  %v282_v24 = vmul.f32 %v525_v19, %v279_v14 }
  0xbf   : > { %v270_v22 = vpop.permute.xlu0 %269 }
  0xc0   : > { %v272_v25 = vadd.f32 %v270_v22, %v265_v16  ;;  %v273_v26 = vadd.f32 %v270_v22, %v266_v17  ;;  %v290_v27 = vpop.permute.xlu1 %289 }
  0xc1   : > { %v292_v28 = vmul.f32 %v526_v20, %v290_v27  ;;  %v293_v29 = vmul.f32 %v527_v21, %v290_v27 }
  0xc2   : > { %v283_v30 = vadd.f32 %v281_v23, %v272_v25  ;;  %v284_v31 = vadd.f32 %v282_v24, %v273_v26 }
  0xc4   : > { %v294_v34 = vadd.f32 %v292_v28, %v283_v30  ;;  %v295_v35 = vadd.f32 %v293_v29, %v284_v31  ;;  %v301_v36 = vpop.permute.xlu0 %300 }
  0xc5   : > { %v303_v39 = vmul.f32 %v528_v32, %v301_v36  ;;  %v304_v40 = vmul.f32 %v529_v33, %v301_v36  ;;  %v312_v41 = vpop.permute.xlu1 %311 }
  0xc6   : > { %v314_v44 = vmul.f32 %v530_v37, %v312_v41  ;;  %v315_v45 = vmul.f32 %v531_v38, %v312_v41 }
  0xc7   : > { %v305_v42 = vadd.f32 %v303_v39, %v294_v34  ;;  %v306_v43 = vadd.f32 %v304_v40, %v295_v35 }
  0xc9   : > { %v334_v51 = vpop.permute.xlu0 %333  ;;  %v316_v52 = vadd.f32 %v314_v44, %v305_v42  ;;  %v317_v53 = vadd.f32 %v315_v45, %v306_v43 }
  0xca   : > { %v323_v48 = vpop.permute.xlu1 %322  ;;  %v336_v58 = vmul.f32 %v534_v49, %v334_v51  ;;  %v337_v59 = vmul.f32 %v535_v50, %v334_v51 }
  0xcb   : > { %v325_v54 = vmul.f32 %v532_v46, %v323_v48  ;;  %v326_v55 = vmul.f32 %v533_v47, %v323_v48 }
  0xcd   : > { %v327_v56 = vadd.f32 %v325_v54, %v316_v52  ;;  %v328_v57 = vadd.f32 %v326_v55, %v317_v53 }
  0xce   : > { %v367_v5 = vpop.permute.xlu0 %366 }
  0xcf   : > { %v345_v62 = vpop.permute.xlu1 %344  ;;  %v338_v63 = vadd.f32 %v336_v58, %v327_v56  ;;  %v339_v0 = vadd.f32 %v337_v59, %v328_v57  ;;  %v369_v9 = vmul.f32 %v540_v3, %v367_v5  ;;  %v370_v10 = vmul.f32 %v541_v4, %v367_v5 }
  0xd0   : > { %v347_v1 = vmul.f32 %v536_v60, %v345_v62  ;;  %v348_v2 = vmul.f32 %v537_v61, %v345_v62 }
  0xd2   : > { %v349_v11 = vadd.f32 %v347_v1, %v338_v63  ;;  %v350_v12 = vadd.f32 %v348_v2, %v339_v0 }
  0xd4   : > { %v356_v8 = vpop.permute.xlu1 %355 }
  0xd5   : > { %v358_v13 = vmul.f32 %v538_v6, %v356_v8  ;;  %v359_v14 = vmul.f32 %v539_v7, %v356_v8 }
  0xd7   : > { %v360_v15 = vadd.f32 %v358_v13, %v349_v11  ;;  %v361_v16 = vadd.f32 %v359_v14, %v350_v12 }
  0xd9   : > { %v371_v17 = vadd.f32 %v369_v9, %v360_v15  ;;  %v372_v18 = vadd.f32 %v370_v10, %v361_v16 }
  0xdb   : > { %373 = vst [vmem:[%s245_s23] sm:$0xff] %v371_v17  ;;  %374 = vst [vmem:[%s245_s23 + $0x8] sm:$0xff] %v372_v18 }
  0xdc   : > { %678 = shalt.err (!%p675_p4)
}
  0xdd   : > { %s679_s11 = scalar_lea.hbm %s936_s5, 256  ;;  %s683_s7 = scalar_lea.hbm %s988_s3, 512 }
  0xde   : > { %p680_p6 = scmp.ne.s32.totalorder %s936_s5, %s679_s11  ;;  %p684_p12 = scmp.lt.u32.totalorder %s936_s5, %s988_s3 }
  0xdf   : > { %p685_p1 = scmp.lt.u32.totalorder %s683_s7, %s679_s11  ;;  %p687_p8 = scmp.lt.u32.totalorder %s679_s11, %s936_s5 }
  0xe0   : > { %p681_p7 = pnand %p680_p6, %p996_p9 }
  0xe1   : > { %p686_p3 = por %p685_p1, %p684_p12 }
  0xe2   : > { %p682_p10 = pneg %p681_p7 }
  0xe3   : > { %p688_p11 = por %p687_p8, %p686_p3 }
  0xe5   : > { %p689_p0 = pnand %p688_p11, %p682_p10 }
  0xe7   : > { %692 = shalt.err (!%p689_p0)
}
  0xe8   : > { %553 = dma.vmem_to_hbm [thread:$0]  (%p996_p9), %s938_s28, 256, %s936_s5, %s376_s6  }
  0xe9 PF: > { %s406_s24 = sand.u32 1, %s727_s12   ;;  %p997_p5 = scmp.ne.s32.totalorder %s993_s27, 0 }
  0xea   : > { %p998_p13 = scmp.ge.s32.totalorder %s747_s17, 2  ;;  %s407_s22 = scalar_lea.sflag [#allocation4], %s406_s24 }
  0xec   : > { %p560_p2 = pnand %p998_p13, %p997_p5 }
  0xee   : > { %722 = dma.done.wait (!%p560_p2), %s407_s22, 256  }
  0xef   : > { %724 = vsyncadd (!%p560_p2), %s407_s22, 4294967040  ;;  %s19_s17 = sadd.s32 1, %s747_s17   ;;  %s999_s12 = smov %s731_s13 }
  0xf0   : > { %p16_p4 = scmp.ge.s32.totalorder %s19_s17, 4   ;;  %s1000_s13 = smov %s735_s14 }
  0xf1   : > { %s1001_s14 = smov %s839_s26  ;;  %s1002_s15 = smov %s743_s16 }
  0xf2   : > { %s1003_s16 = smov %s1005_s20  ;;  %18 = sbr.rel (!%p16_p4) target bundleno = 6 (0x6), region = 92 }
  0xf9   :  { %412 = vsyncpa [#allocation3], 1 }
  0xfa   :  { %414 = vsyncpa [#allocation3 + $0x1], 1 }
  0xfb   :  { %415 = vsyncpa [#allocation4], 1 }
  0xfc   :  { %417 = vsyncpa [#allocation4 + $0x1], 1 }

</bundles_post_ra>
